<compile_context>
chip_gen: v7x
topology: tpu7x:2x2x1
jax: 0.10.0
libtpu: 0.0.40
codegen_flags: <defaults>
</compile_context>

<pallas_src>
import math
import functools

import jax
import jax.numpy as jnp
from jax.experimental import pallas as pl
from jax.experimental.pallas import tpu as pltpu


def summarizer_kernel(ids_ref, tab_ref, q_ref, wkv_ref, wo_ref, bias_ref, out_ref,
                      *, ln_eps, batch_block, seq_len, num_heads, n_tok):
    Bb, T, H = batch_block, seq_len, num_heads
    rows = Bb * T
    n_tab, D = tab_ref.shape
    d_k = D // H
    M = H * n_tok                                     # block-diag q rows = (head, query)

    # ---- fused token + positional embedding: "two-hot" rows @ stacked table (MXU) ----
    ids = ids_ref[...]                                # (rows, 2) int32
    tok_id = ids[:, 0:1]                              # token id  (< n_vocab)
    pos_id = ids[:, 1:2]                              # n_vocab + position (no collision)
    col = jax.lax.broadcasted_iota(jnp.int32, (rows, n_tab), 1)
    two_hot = jnp.where((col == tok_id) | (col == pos_id), 1.0, 0.0).astype(jnp.bfloat16)
    # NOTE: out-of-range token ids give an all-zero row (zero embedding), unlike torch.
    x = jnp.dot(two_hot, tab_ref[...], preferred_element_type=jnp.float32)  # tok+pos, (rows, D)
    x = x.astype(jnp.bfloat16)

    # ---- fused K|V projection: one (rows, D) @ (D, 2D) matmul ----
    kv = jnp.dot(x, wkv_ref[...], preferred_element_type=jnp.float32)       # (rows, 2D)
    kv = kv + bias_ref[0:1, :]                                              # [b_k | b_v]
    k = kv[:, :D].astype(jnp.bfloat16).reshape(Bb, T, D)
    v = kv[:, D:].astype(jnp.bfloat16).reshape(Bb, T, D)

    # ---- attention scores: block-diagonal (scaled) q folds the per-head structure
    #      into the lane pattern of q, so one full-K(=D) batched matmul gives all
    #      (head, query) scores.  Only the tiny (M, D) q is replicated per batch row.
    q = jnp.broadcast_to(q_ref[...], (Bb, M, D))                            # (Bb, M, D) bf16
    scores = jnp.einsum('bmd,btd->bmt', q, k,
                        preferred_element_type=jnp.float32)                 # (Bb, M, T)

    m = jnp.max(scores, axis=-1, keepdims=True)
    p = jnp.exp(scores - m)
    l = jnp.sum(p, axis=-1, keepdims=True)
    attn = p * pl.reciprocal(l, approx=True)
    # TODO(synk): attention dropout (p=0.1) is a train-time-only op; eval forward omits it.

    # ---- context: one batched matmul; row m=(h,q) holds head-h context in head-h lanes ----
    full_ctx = jnp.einsum('bmt,btd->bmd', attn.astype(jnp.bfloat16), v,
                          preferred_element_type=jnp.float32)               # (Bb, M, D)
    # assemble concat-heads layout with static slices (no per-head matmuls, no head-sum)
    ctx = jnp.concatenate(
        [full_ctx[:, h * n_tok:(h + 1) * n_tok, h * d_k:(h + 1) * d_k] for h in range(H)],
        axis=-1)                                                            # (Bb, n_tok, D)
    ctx = ctx.reshape(Bb * n_tok, D).astype(jnp.bfloat16)

    # ---- single output projection + bias ----
    o = jnp.dot(ctx, wo_ref[...], preferred_element_type=jnp.float32)       # (Bb*n_tok, D)
    o = o + bias_ref[1:2, 0:D]

    # ---- LayerNorm over the embedding dim ----
    mu = jnp.mean(o, axis=-1, keepdims=True)
    dlt = o - mu
    var = jnp.mean(dlt * dlt, axis=-1, keepdims=True)
    y = dlt * jax.lax.rsqrt(var + ln_eps) * bias_ref[2:3, 0:D] + bias_ref[3:4, 0:D]

    # ---- one multi-sublane store per step (no per-token concat / 1-row stores) ----
    out_ref[...] = y.astype(out_ref.dtype)


def pack_params(tok_emb, pos_emb, summary_tokens,
                w_q, b_q, w_k, b_k, w_v, b_v, w_o, b_o,
                ln_gamma, ln_beta, *, num_heads):
    """One-time parameter prep.  Weights use (in_dim, out_dim) layout: y = x @ W + b."""
    n_vocab, D = tok_emb.shape
    context_size = pos_emb.shape[0]
    n_tok = summary_tokens.shape[0]
    H = num_heads
    d_k = D // H
    scale = 1.0 / math.sqrt(d_k)

    # token + positional tables stacked -> single "two-hot" lookup matmul in the kernel
    table = jnp.concatenate([tok_emb, pos_emb], axis=0).astype(jnp.bfloat16)

    # q depends only on parameters: precompute, fold 1/sqrt(d_k), block-diagonal over heads
    q = (summary_tokens @ w_q + b_q[None, :]) * scale                 # (n_tok, D) f32
    q_heads = jnp.transpose(q.reshape(n_tok, H, d_k), (1, 0, 2))      # (H, n_tok, d_k)
    q_block = jnp.zeros((H * n_tok, D), jnp.float32)
    for h in range(H):
        q_block = q_block.at[h * n_tok:(h + 1) * n_tok,
                             h * d_k:(h + 1) * d_k].set(q_heads[h])

    w_kv = jnp.concatenate([w_k, w_v], axis=1).astype(jnp.bfloat16)   # (D, 2D)

    pad = jnp.zeros((D,), jnp.float32)
    bias = jnp.stack([
        jnp.concatenate([b_k, b_v]).astype(jnp.float32),              # row 0: [b_k | b_v]
        jnp.concatenate([b_o.astype(jnp.float32), pad]),              # row 1: [b_o  | 0 ]
        jnp.concatenate([ln_gamma.astype(jnp.float32), pad]),         # row 2: [gamma| 0 ]
        jnp.concatenate([ln_beta.astype(jnp.float32), pad]),          # row 3: [beta | 0 ]
    ])                                                                # (4, 2D) f32

    return dict(
        table=table,
        q_block=q_block.astype(jnp.bfloat16),
        q_heads=q_heads.astype(jnp.bfloat16),     # reference only (not passed to kernel)
        w_kv=w_kv,
        w_o=w_o.astype(jnp.bfloat16),
        bias=bias,
        n_vocab=n_vocab,
        context_size=context_size,
        num_heads=H,
        n_tok=n_tok,
    )


def _pick_batch_block(B, T, n_tok):
    """Largest divisor of B that keeps >=2 grid steps (v7x: one block per TensorCore),
    keeps the output block sublane-aligned, and caps packed rows at ~512."""
    best = 1
    for bb in range(1, B + 1):
        if B % bb:
            continue
        if B >= 2 and B // bb < 2:
            continue
        if (bb * n_tok) % 8 and bb * n_tok != B * n_tok:
            continue
        if bb * T > 512:
            break
        best = bb
    return best


def summarizer_forward(input_seq, params, *, ln_eps=1e-5, batch_block=None):
    B, T = input_seq.shape
    table, q_block = params["table"], params["q_block"]
    w_kv, w_o, bias = params["w_kv"], params["w_o"], params["bias"]
    n_vocab, H, n_tok = params["n_vocab"], params["num_heads"], params["n_tok"]
    n_tab, D = table.shape
    M = q_block.shape[0]

    if batch_block is None:
        batch_block = _pick_batch_block(B, T, n_tok)
    assert B % batch_block == 0
    grid = (B // batch_block,)
    rows = batch_block * T

    # token ids + (offset) position ids packed as a single int32 array (B*T, 2)
    tok_ids = input_seq.astype(jnp.int32).reshape(B * T, 1)
    pos_ids = (jnp.tile(jnp.arange(T, dtype=jnp.int32), (B,)) + n_vocab).reshape(B * T, 1)
    ids = jnp.concatenate([tok_ids, pos_ids], axis=1)

    kernel = functools.partial(summarizer_kernel, ln_eps=ln_eps,
                               batch_block=batch_block, seq_len=T,
                               num_heads=H, n_tok=n_tok)

    out_flat = pl.pallas_call(
        kernel,
        out_shape=jax.ShapeDtypeStruct((B * n_tok, D), jnp.float32),
        grid_spec=pltpu.PrefetchScalarGridSpec(
            num_scalar_prefetch=0,
            grid=grid,
            in_specs=[
                pl.BlockSpec((rows, 2), lambda g: (g, 0)),          # token/pos ids
                pl.BlockSpec((n_tab, D), lambda g: (0, 0)),         # stacked emb table
                pl.BlockSpec((M, D), lambda g: (0, 0)),             # block-diag scaled q
                pl.BlockSpec((D, 2 * D), lambda g: (0, 0)),         # fused W_k|W_v
                pl.BlockSpec((D, D), lambda g: (0, 0)),             # W_o
                pl.BlockSpec((4, 2 * D), lambda g: (0, 0)),         # biases + LN gamma/beta
            ],
            out_specs=pl.BlockSpec((batch_block * n_tok, D), lambda g: (g, 0)),
        ),
        compiler_params=pltpu.CompilerParams(
            dimension_semantics=("parallel",)),
    )(ids, table, q_block, w_kv, w_o, bias)

    return out_flat.reshape(B, n_tok, D)


def reference_forward(input_seq, params, *, ln_eps=1e-5):
    """Pure-JAX reference of the same forward with the same mixed-precision policy."""
    f32 = jnp.float32
    table = params["table"]
    n_vocab, H, n_tok = params["n_vocab"], params["num_heads"], params["n_tok"]
    n_tab, D = table.shape
    d_k = D // H
    B, T = input_seq.shape

    x = table[:n_vocab][input_seq].astype(f32) + table[n_vocab:n_vocab + T].astype(f32)[None]
    x = x.astype(jnp.bfloat16)                                                  # (B, T, D)

    kv = jnp.einsum('btd,de->bte', x, params["w_kv"],
                    preferred_element_type=f32) + params["bias"][0][None, None, :]
    k = kv[..., :D].astype(jnp.bfloat16).reshape(B, T, H, d_k)
    v = kv[..., D:].astype(jnp.bfloat16).reshape(B, T, H, d_k)

    s = jnp.einsum('hqe,bthe->bhqt', params["q_heads"], k, preferred_element_type=f32)
    attn = jax.nn.softmax(s, axis=-1)
    ctx = jnp.einsum('bhqt,bthe->bqhe', attn.astype(jnp.bfloat16), v,
                     preferred_element_type=f32)
    ctx = ctx.reshape(B, n_tok, D).astype(jnp.bfloat16)
    o = jnp.einsum('bqd,de->bqe', ctx, params["w_o"],
                   preferred_element_type=f32) + params["bias"][1, :D][None, None, :]

    mu = jnp.mean(o, axis=-1, keepdims=True)
    d = o - mu
    var = jnp.mean(d * d, axis=-1, keepdims=True)
    return d * jax.lax.rsqrt(var + ln_eps) * params["bias"][2, :D] + params["bias"][3, :D]


if __name__ == "__main__":
    # Small shapes consistent with the module (B=8 so batch packing + 2-step grid engage).
    B, T = 8, 8
    embed_dim, num_heads = 32, 4
    n_tok = 4
    n_vocab = 128
    context_size = 16

    key = jax.random.PRNGKey(0)
    ks = jax.random.split(key, 12)
    input_seq = jax.random.randint(ks[0], (B, T), 0, n_vocab, dtype=jnp.int32)
    tok_emb = jax.random.normal(ks[1], (n_vocab, embed_dim), jnp.float32)
    pos_emb = jax.random.normal(ks[2], (context_size, embed_dim), jnp.float32)
    summary = jax.random.normal(ks[3], (n_tok, embed_dim), jnp.float32)

    wscale = 1.0 / math.sqrt(embed_dim)
    w_q = jax.random.normal(ks[4], (embed_dim, embed_dim), jnp.float32) * wscale
    w_k = jax.random.normal(ks[5], (embed_dim, embed_dim), jnp.float32) * wscale
    w_v = jax.random.normal(ks[6], (embed_dim, embed_dim), jnp.float32) * wscale
    w_o = jax.random.normal(ks[7], (embed_dim, embed_dim), jnp.float32) * wscale
    b_q = jax.random.normal(ks[8], (embed_dim,), jnp.float32) * 0.01
    b_k = jax.random.normal(ks[9], (embed_dim,), jnp.float32) * 0.01
    b_v = jax.random.normal(ks[10], (embed_dim,), jnp.float32) * 0.01
    b_o = jax.random.normal(ks[11], (embed_dim,), jnp.float32) * 0.01
    ln_gamma = jnp.ones((embed_dim,), jnp.float32)
    ln_beta = jnp.zeros((embed_dim,), jnp.float32)

    params = pack_params(tok_emb, pos_emb, summary,
                         w_q, b_q, w_k, b_k, w_v, b_v, w_o, b_o,
                         ln_gamma, ln_beta, num_heads=num_heads)

    out = summarizer_forward(input_seq, params)
    out = jax.block_until_ready(out)

    ref = reference_forward(input_seq, params)
    assert out.shape == (B, n_tok, embed_dim)
    max_diff = float(jnp.max(jnp.abs(out - ref)))
    assert jnp.allclose(out, ref, atol=2e-2, rtol=2e-2), f"mismatch, max|d|={max_diff}"

    print("KERNEL_OK")
</pallas_src>

<mosaic_0001>
module attributes {stable_mosaic.version = 11 : i64} {
  func.func @summarizer_kernel(%arg0: i32, %arg1: memref<32x2xi32, #tpu.memory_space<vmem>>, %arg2: memref<144x32xbf16, #tpu.memory_space<vmem>>, %arg3: memref<16x32xbf16, #tpu.memory_space<vmem>>, %arg4: memref<32x64xbf16, #tpu.memory_space<vmem>>, %arg5: memref<32x32xbf16, #tpu.memory_space<vmem>>, %arg6: memref<4x64xf32, #tpu.memory_space<vmem>>, %arg7: memref<16x32xf32, #tpu.memory_space<vmem>>) attributes {dimension_semantics = [#tpu.dimension_semantics<parallel>], iteration_bounds = array<i64: 2>, scalar_prefetch = 0 : i64, scratch_operands = 0 : i64, tpu.core_type = #tpu.core_type<tc>, window_params = [{transform_indices = @transform_0, window_bounds = array<i64: 32, 2>}, {pipeline_mode = #tpu.pipeline_mode<synchronous>, transform_indices = @transform_1, window_bounds = array<i64: 144, 32>}, {pipeline_mode = #tpu.pipeline_mode<synchronous>, transform_indices = @transform_2, window_bounds = array<i64: 16, 32>}, {pipeline_mode = #tpu.pipeline_mode<synchronous>, transform_indices = @transform_3, window_bounds = array<i64: 32, 64>}, {pipeline_mode = #tpu.pipeline_mode<synchronous>, transform_indices = @transform_4, window_bounds = array<i64: 32, 32>}, {pipeline_mode = #tpu.pipeline_mode<synchronous>, transform_indices = @transform_5, window_bounds = array<i64: 4, 64>}, {transform_indices = @transform_6, window_bounds = array<i64: 16, 32>}]} {
    %c0 = arith.constant 0 : index
    %c0_0 = arith.constant 0 : index
    %0 = vector.load %arg1[%c0, %c0_0] : memref<32x2xi32, #tpu.memory_space<vmem>>, vector<32x2xi32>
    %1 = vector.extract_strided_slice %0 {offsets = [0, 0], sizes = [32, 1], strides = [1, 1]} : vector<32x2xi32> to vector<32x1xi32>
    %2 = vector.extract_strided_slice %0 {offsets = [0, 1], sizes = [32, 1], strides = [1, 1]} : vector<32x2xi32> to vector<32x1xi32>
    %3 = tpu.iota {dimensions = array<i32: 1>} : vector<32x144xi32>
    %4 = vector.broadcast %1 : vector<32x1xi32> to vector<32x144xi32>
    %5 = arith.cmpi eq, %3, %4 : vector<32x144xi32>
    %6 = vector.broadcast %2 : vector<32x1xi32> to vector<32x144xi32>
    %7 = arith.cmpi eq, %3, %6 : vector<32x144xi32>
    %8 = arith.ori %5, %7 : vector<32x144xi1>
    %cst = arith.constant 1.000000e+00 : f32
    %cst_1 = arith.constant 0.000000e+00 : f32
    %9 = vector.broadcast %cst : f32 to vector<32x144xf32>
    %10 = vector.broadcast %cst_1 : f32 to vector<32x144xf32>
    %11 = arith.select %8, %9, %10 : vector<32x144xi1>, vector<32x144xf32>
    %12 = arith.truncf %11 : vector<32x144xf32> to vector<32x144xbf16>
    %c0_2 = arith.constant 0 : index
    %c0_3 = arith.constant 0 : index
    %13 = vector.load %arg2[%c0_2, %c0_3] : memref<144x32xbf16, #tpu.memory_space<vmem>>, vector<144x32xbf16>
    %cst_4 = arith.constant dense<0.000000e+00> : vector<32x32xf32>
    %14 = tpu.matmul %12, %13, %cst_4 {dimension_numbers = #tpu.dot_dimension_numbers<[1], [0], [0], [1], [0, 0, 1, 1], [], []>} : vector<32x144xbf16>, vector<144x32xbf16>, vector<32x32xf32> -> vector<32x32xf32>
    %15 = arith.truncf %14 : vector<32x32xf32> to vector<32x32xbf16>
    %c0_5 = arith.constant 0 : index
    %c0_6 = arith.constant 0 : index
    %16 = vector.load %arg4[%c0_5, %c0_6] : memref<32x64xbf16, #tpu.memory_space<vmem>>, vector<32x64xbf16>
    %cst_7 = arith.constant dense<0.000000e+00> : vector<32x64xf32>
    %17 = tpu.matmul %15, %16, %cst_7 {dimension_numbers = #tpu.dot_dimension_numbers<[1], [0], [0], [1], [0, 0, 1, 1], [], []>} : vector<32x32xbf16>, vector<32x64xbf16>, vector<32x64xf32> -> vector<32x64xf32>
    %c0_8 = arith.constant 0 : index
    %c0_9 = arith.constant 0 : index
    %18 = vector.load %arg6[%c0_8, %c0_9] : memref<4x64xf32, #tpu.memory_space<vmem>>, vector<1x64xf32>
    %19 = vector.broadcast %18 : vector<1x64xf32> to vector<32x64xf32>
    %20 = arith.addf %17, %19 : vector<32x64xf32>
    %21 = vector.extract_strided_slice %20 {offsets = [0, 0], sizes = [32, 32], strides = [1, 1]} : vector<32x64xf32> to vector<32x32xf32>
    %22 = arith.truncf %21 : vector<32x32xf32> to vector<32x32xbf16>
    %23 = vector.shape_cast %22 : vector<32x32xbf16> to vector<4x8x32xbf16>
    %24 = vector.extract_strided_slice %20 {offsets = [0, 32], sizes = [32, 32], strides = [1, 1]} : vector<32x64xf32> to vector<32x32xf32>
    %25 = arith.truncf %24 : vector<32x32xf32> to vector<32x32xbf16>
    %26 = vector.shape_cast %25 : vector<32x32xbf16> to vector<4x8x32xbf16>
    %c0_10 = arith.constant 0 : index
    %c0_11 = arith.constant 0 : index
    %27 = vector.load %arg3[%c0_10, %c0_11] : memref<16x32xbf16, #tpu.memory_space<vmem>>, vector<16x32xbf16>
    %28 = vector.shape_cast %27 : vector<16x32xbf16> to vector<1x16x32xbf16>
    %29 = vector.broadcast %28 : vector<1x16x32xbf16> to vector<4x16x32xbf16>
    "tpu.trace_start"() <{level = 10 : i32, message = "bmd,btd->bmt"}> : () -> ()
    %cst_12 = arith.constant dense<0.000000e+00> : vector<4x16x8xf32>
    %30 = tpu.matmul %29, %23, %cst_12 {dimension_numbers = #tpu.dot_dimension_numbers<[2], [2], [1], [1], [0, 0, 0, 1, 1, 1], [0], [0]>} : vector<4x16x32xbf16>, vector<4x8x32xbf16>, vector<4x16x8xf32> -> vector<4x16x8xf32>
    "tpu.trace_stop"() : () -> ()
    %cst_13 = arith.constant dense<0xFF800000> : vector<4x16xf32>
    %31 = vector.multi_reduction <maximumf>, %30, %cst_13 [2] : vector<4x16x8xf32> to vector<4x16xf32>
    %32 = vector.shape_cast %31 : vector<4x16xf32> to vector<4x16x1xf32>
    %33 = vector.broadcast %32 : vector<4x16x1xf32> to vector<4x16x8xf32>
    %34 = arith.subf %30, %33 : vector<4x16x8xf32>
    %35 = math.exp %34 : vector<4x16x8xf32>
    %cst_14 = arith.constant dense<0.000000e+00> : vector<4x16xf32>
    %36 = vector.multi_reduction <add>, %35, %cst_14 [2] : vector<4x16x8xf32> to vector<4x16xf32>
    %37 = vector.shape_cast %36 : vector<4x16xf32> to vector<4x16x1xf32>
    %38 = tpu.reciprocal %37 {approx = true} : vector<4x16x1xf32> -> vector<4x16x1xf32>
    %39 = vector.broadcast %38 : vector<4x16x1xf32> to vector<4x16x8xf32>
    %40 = arith.mulf %35, %39 : vector<4x16x8xf32>
    %41 = arith.truncf %40 : vector<4x16x8xf32> to vector<4x16x8xbf16>
    "tpu.trace_start"() <{level = 10 : i32, message = "bmt,btd->bmd"}> : () -> ()
    %cst_15 = arith.constant dense<0.000000e+00> : vector<4x16x32xf32>
    %42 = tpu.matmul %41, %26, %cst_15 {dimension_numbers = #tpu.dot_dimension_numbers<[2], [1], [1], [2], [0, 0, 0, 1, 1, 2], [0], [0]>} : vector<4x16x8xbf16>, vector<4x8x32xbf16>, vector<4x16x32xf32> -> vector<4x16x32xf32>
    "tpu.trace_stop"() : () -> ()
    %43 = vector.extract_strided_slice %42 {offsets = [0, 0, 0], sizes = [4, 4, 8], strides = [1, 1, 1]} : vector<4x16x32xf32> to vector<4x4x8xf32>
    %44 = vector.extract_strided_slice %42 {offsets = [0, 4, 8], sizes = [4, 4, 8], strides = [1, 1, 1]} : vector<4x16x32xf32> to vector<4x4x8xf32>
    %45 = vector.extract_strided_slice %42 {offsets = [0, 8, 16], sizes = [4, 4, 8], strides = [1, 1, 1]} : vector<4x16x32xf32> to vector<4x4x8xf32>
    %46 = vector.extract_strided_slice %42 {offsets = [0, 12, 24], sizes = [4, 4, 8], strides = [1, 1, 1]} : vector<4x16x32xf32> to vector<4x4x8xf32>
    %47 = tpu.concatenate %43, %44, %45, %46 in 2 : vector<4x4x8xf32>, vector<4x4x8xf32>, vector<4x4x8xf32>, vector<4x4x8xf32> -> vector<4x4x32xf32>
    %48 = vector.shape_cast %47 : vector<4x4x32xf32> to vector<16x32xf32>
    %49 = arith.truncf %48 : vector<16x32xf32> to vector<16x32xbf16>
    %c0_16 = arith.constant 0 : index
    %c0_17 = arith.constant 0 : index
    %50 = vector.load %arg5[%c0_16, %c0_17] : memref<32x32xbf16, #tpu.memory_space<vmem>>, vector<32x32xbf16>
    %cst_18 = arith.constant dense<0.000000e+00> : vector<16x32xf32>
    %51 = tpu.matmul %49, %50, %cst_18 {dimension_numbers = #tpu.dot_dimension_numbers<[1], [0], [0], [1], [0, 0, 1, 1], [], []>} : vector<16x32xbf16>, vector<32x32xbf16>, vector<16x32xf32> -> vector<16x32xf32>
    %c1 = arith.constant 1 : index
    %c0_19 = arith.constant 0 : index
    %52 = vector.load %arg6[%c1, %c0_19] : memref<4x64xf32, #tpu.memory_space<vmem>>, vector<1x32xf32>
    %53 = vector.broadcast %52 : vector<1x32xf32> to vector<16x32xf32>
    %54 = arith.addf %51, %53 : vector<16x32xf32>
    %cst_20 = arith.constant dense<0.000000e+00> : vector<16xf32>
    %55 = vector.multi_reduction <add>, %54, %cst_20 [1] : vector<16x32xf32> to vector<16xf32>
    %56 = vector.shape_cast %55 : vector<16xf32> to vector<16x1xf32>
    %cst_21 = arith.constant 3.200000e+01 : f32
    %57 = vector.broadcast %cst_21 : f32 to vector<16x1xf32>
    %58 = arith.divf %56, %57 : vector<16x1xf32>
    %59 = vector.broadcast %58 : vector<16x1xf32> to vector<16x32xf32>
    %60 = arith.subf %54, %59 : vector<16x32xf32>
    %61 = arith.mulf %60, %60 : vector<16x32xf32>
    %cst_22 = arith.constant dense<0.000000e+00> : vector<16xf32>
    %62 = vector.multi_reduction <add>, %61, %cst_22 [1] : vector<16x32xf32> to vector<16xf32>
    %63 = vector.shape_cast %62 : vector<16xf32> to vector<16x1xf32>
    %cst_23 = arith.constant 3.200000e+01 : f32
    %64 = vector.broadcast %cst_23 : f32 to vector<16x1xf32>
    %65 = arith.divf %63, %64 : vector<16x1xf32>
    %cst_24 = arith.constant 9.99999974E-6 : f32
    %66 = vector.broadcast %cst_24 : f32 to vector<16x1xf32>
    %67 = arith.addf %65, %66 : vector<16x1xf32>
    %68 = math.rsqrt %67 : vector<16x1xf32>
    %69 = vector.broadcast %68 : vector<16x1xf32> to vector<16x32xf32>
    %70 = arith.mulf %60, %69 : vector<16x32xf32>
    %c2 = arith.constant 2 : index
    %c0_25 = arith.constant 0 : index
    %71 = vector.load %arg6[%c2, %c0_25] : memref<4x64xf32, #tpu.memory_space<vmem>>, vector<1x32xf32>
    %72 = vector.broadcast %71 : vector<1x32xf32> to vector<16x32xf32>
    %73 = arith.mulf %70, %72 : vector<16x32xf32>
    %c3 = arith.constant 3 : index
    %c0_26 = arith.constant 0 : index
    %74 = vector.load %arg6[%c3, %c0_26] : memref<4x64xf32, #tpu.memory_space<vmem>>, vector<1x32xf32>
    %75 = vector.broadcast %74 : vector<1x32xf32> to vector<16x32xf32>
    %76 = arith.addf %73, %75 : vector<16x32xf32>
    %c0_27 = arith.constant 0 : index
    %c0_28 = arith.constant 0 : index
    %77 = vector.load %arg7[%c0_27, %c0_28] : memref<16x32xf32, #tpu.memory_space<vmem>>, vector<16x32xf32>
    tpu.vector_store %arg7[%c0_27, %c0_28], %76 {strides = array<i32>} : memref<16x32xf32, #tpu.memory_space<vmem>>, vector<16x32xf32>,
    return
  }
  func.func @transform_0(%arg0: i32) -> (i32, i32) {
    %c0_i32 = arith.constant 0 : i32
    %c0_i32_0 = arith.constant 0 : i32
    return %arg0, %c0_i32 : i32, i32
  }
  func.func @transform_1(%arg0: i32) -> (i32, i32) {
    %c0_i32 = arith.constant 0 : i32
    %c0_i32_0 = arith.constant 0 : i32
    %c0_i32_1 = arith.constant 0 : i32
    return %c0_i32, %c0_i32_0 : i32, i32
  }
  func.func @transform_2(%arg0: i32) -> (i32, i32) {
    %c0_i32 = arith.constant 0 : i32
    %c0_i32_0 = arith.constant 0 : i32
    %c0_i32_1 = arith.constant 0 : i32
    return %c0_i32, %c0_i32_0 : i32, i32
  }
  func.func @transform_3(%arg0: i32) -> (i32, i32) {
    %c0_i32 = arith.constant 0 : i32
    %c0_i32_0 = arith.constant 0 : i32
    %c0_i32_1 = arith.constant 0 : i32
    return %c0_i32, %c0_i32_0 : i32, i32
  }
  func.func @transform_4(%arg0: i32) -> (i32, i32) {
    %c0_i32 = arith.constant 0 : i32
    %c0_i32_0 = arith.constant 0 : i32
    %c0_i32_1 = arith.constant 0 : i32
    return %c0_i32, %c0_i32_0 : i32, i32
  }
  func.func @transform_5(%arg0: i32) -> (i32, i32) {
    %c0_i32 = arith.constant 0 : i32
    %c0_i32_0 = arith.constant 0 : i32
    %c0_i32_1 = arith.constant 0 : i32
    return %c0_i32, %c0_i32_0 : i32, i32
  }
  func.func @transform_6(%arg0: i32) -> (i32, i32) {
    %c0_i32 = arith.constant 0 : i32
    %c0_i32_0 = arith.constant 0 : i32
    return %arg0, %c0_i32 : i32, i32
  }
}

</mosaic_0001>

<bundles_post_ra>
// kernel: tpu_custom_call.1
= control target key start
LH: loop header
LB: loop body
LE: loop exit
PB: predicated region body
PF: predicated region fallthrough
CT: control target
= control target key end

     0   :  { %11 = vsyncpa [#allocation3], 0  ;;  %s1854_s0 = inlined_call_operand.vmem [shape: s32[64,2], index: 0, kind: input, shape index: {}]   ;;  %s1855_s1 = inlined_call_operand.vmem [shape: bf16[144,32], index: 1, kind: input, shape index: {}]   ;;  %s1856_s2 = inlined_call_operand.vmem [shape: bf16[16,32], index: 2, kind: input, shape index: {}]   ;;  %s1857_s3 = inlined_call_operand.vmem [shape: bf16[32,64], index: 3, kind: input, shape index: {}]   ;;  %s1858_s4 = inlined_call_operand.vmem [shape: bf16[32,32], index: 4, kind: input, shape index: {}]   ;;  %s1859_s5 = inlined_call_operand.vmem [shape: f32[4,64], index: 5, kind: input, shape index: {}]   ;;  %s1860_s6 = inlined_call_operand.hbm [shape: f32[32,32], index: 6, kind: output, shape index: {}]  }
   0x1   :  { %13 = vsyncpa [#allocation3 + $0x1], 0  ;;  %s1599_s21 = smov 0   ;;  %s1601_s22 = smov 0  }
   0x2   :  { %s1603_s23 = smov 0   ;;  %s1605_s24 = smov 0  }
   0x3 LB: > { %s1620_s25 = sadd.s32 4294967295, %s1553_s24   ;;  %s1246_s26 = sadd.s32 4294967294, %s1553_s24   ;;  %s1553_s24 = sphi %s1605_s24, %s1866_s24   ;;  %s1549_s23 = sphi %s1603_s23, %s1865_s23   ;;  %s1545_s22 = sphi %s1601_s22, %s1864_s22   ;;  %s1541_s21 = sphi %s1599_s21, %s1863_s21  }
   0x4   : > { %s1624_s27 = sadd.s32 1, %s1553_s24   ;;  %s157_s28 = sadd.s32 1, %s1549_s23 }
   0x5   : > { %s154_s29 = ssub.s32 %s1553_s24, %s1624_s27  ;;  %p167_p0 = scmp.ne.s32.totalorder %s1549_s23, %s1545_s22 }
   0x6   : > { %p155_p1 = scmp.eq.s32.totalorder %s154_s29, 0  ;;  %p168_p2 = scmp.eq.s32.totalorder %s1620_s25, 1 }
   0x7   : > { %p173_p3 = scmp.ne.s32.totalorder %s1545_s22, %s1541_s21  ;;  %p174_p4 = scmp.eq.s32.totalorder %s1246_s26, 1 }
   0x8   : > { %s1635_s30 = scalar_select %p155_p1, %s1549_s23, %s157_s28  }
   0x9   : > { %p1637_p5 = por %p168_p2, %p167_p0  ;;  %p1641_p6 = por %p174_p4, %p173_p3 }
   0xa   : > { %p1249_p7 = scmp.ge.s32.totalorder %s1553_s24, 1  ;;  %p216_p8 = scmp.lt.s32.totalorder %s1553_s24, 3 }
   0xc   : > { %p217_p9 = pnand %p1249_p7, %p216_p8 }
   0xd   : > { %s1251_s9 = sshll.u32 (!%p217_p9), %s1620_s25, 2  ;;  %v1441_v0 = vld [vmem:[%s1855_s1] sm:$0xff] (!%p217_p9)   ;;  %v1555_v1 = vmov (!%p217_p9), 1   ;;  %v1556_v2 = vmov (!%p217_p9), 0   ;;  %v1442_v3 = vld [vmem:[%s1855_s1 + $0x8] sm:$0xff] (!%p217_p9)   ;;  %v1443_v5 = vld [vmem:[%s1855_s1 + $0x10] sm:$0xff] (!%p217_p9)   ;;  %v258_v16 = vlaneseq (!%p217_p9) }
   0xe   : > { %220 = sbr.rel (%p217_p9) target bundleno = 1934 (0x78e), region = 44  ;;  %1437 = vset.pattern.permute.xlu1 (!%p217_p9), %v1555_v1  ;;  %1436 = vset.pattern.permute.xlu0 (!%p217_p9), %v1556_v2  ;;  %p247_p10 = scmp.lt.s32.totalorder (!%p217_p9), %s1251_s9, 7  ;;  %v1444_v7 = vld [vmem:[%s1855_s1 + $0x18] sm:$0xff] (!%p217_p9)   ;;  %v1445_v10 = vld [vmem:[%s1855_s1 + $0x20] sm:$0xff] (!%p217_p9)   ;;  %v1446_v11 = vld [vmem:[%s1855_s1 + $0x28] sm:$0xff] (!%p217_p9)   ;;  %v1557_v15 = vmov (!%p217_p9), 0.0  }
   0xf   : > { %400 = vmatprep.subr.bf16.mxu0 (!%p217_p9), %v1556_v2  ;;  %v1447_v12 = vld [vmem:[%s1855_s1 + $0x30] sm:$0xff] (!%p217_p9)   ;;  %v1448_v13 = vld [vmem:[%s1855_s1 + $0x38] sm:$0xff] (!%p217_p9)   ;;  %v1449_v14 = vld [vmem:[%s1855_s1 + $0x40] sm:$0xff] (!%p217_p9)   ;;  %v259_v17 = vand.u32 (!%p217_p9), 127, %v258_v16  ;;  %vm393_vm11 = vcmask (!%p217_p9), 130048   ;;  %s1560_s10 = smov (!%p217_p9), 96  }
  0x10   : > { %401 = vmatpush1.bf16.msra.mxu0 (!%p217_p9), %v1441_v0  ;;  %v1558_v28 = vmov (!%p217_p9), 1.0|1.0   ;;  %v1450_v34 = vld [vmem:[%s1857_s3] sm:$0xff] (!%p217_p9)   ;;  %v1451_v35 = vld [vmem:[%s1857_s3 + $0x8] sm:$0xff] (!%p217_p9)   ;;  %s1301_s29 = sshll.u32 (!%p217_p9), %s1620_s25, 8  ;;  %s1561_s15 = smov (!%p217_p9), [#allocation2]  }
  0x11   : > { %402 = vmatprep.subr.bf16.mxu0 (!%p217_p9), %v1556_v2  ;;  %v260_v18 = vadd.s32 (!%p217_p9), 128, %v259_v17  ;;  %1325 = vmatprep.subr.bf16.mxu1 (!%p217_p9), %v1450_v34  ;;  %v1268_v46 = vld [vmem:[%s1859_s5] ss:$0 sm:$0xff] (!%p217_p9)  ;;  %s1807_s13 = scalar_lea.hbm (!%p217_p9), %s1860_s6, %s1301_s29  ;;  %s1495_s16 = sshll.u32 (!%p217_p9), %s1561_s15, 4  ;;  %s1496_s16 = int_to_ptr.vmem [resolvable:$false] %s1495_s16 }
  0x12   : > { %1326 = vmatpush3.bf16.msra.mxu1 (!%p217_p9), %v1450_v34  ;;  %v1452_v56 = vld [vmem:[%s1856_s2] sm:$0xff] (!%p217_p9)  }
  0x13   : > { %1327 = vmatprep.subr.bf16.mxu1 (!%p217_p9), %v1451_v35 }
  0x14   : > { %403 = vmatpush1.bf16.msra.mxu0 (!%p217_p9), %v1442_v3 }
  0x15   : > { %s1868_s9 = smov (!%p247_p10, %s1251_s9), 7  ;;  %404 = vmatprep.subr.bf16.mxu0 %v1556_v2 }
  0x16   : > { %s1252_s14 = sshll.u32 %s1868_s9, 3  ;;  %1328 = vmatpush3.bf16.msra.mxu1 %v1451_v35 }
  0x17   : > { %s250_s17 = scalar_lea.vmem %s1854_s0, %s1252_s14  ;;  %1333 = vmatprep.subr.bf16.mxu1 %v1557_v15 }
  0x18   : > { %v254_v4 = vld [vmem:[%s250_s17] sm:$0xff]  ;;  %v255_v6 = vld [vmem:[%s250_s17 + $0x8] sm:$0xff]  ;;  %405 = vmatpush1.bf16.msra.mxu0 %v1443_v5  ;;  %v256_v8 = vld [vmem:[%s250_s17 + $0x10] sm:$0xff] }
  0x19   : > { %282 = vperm.xlu1 %1437, %v254_v4   ;;  %262 = vperm.xlu0 %1436, %v254_v4   ;;  %v257_v9 = vld [vmem:[%s250_s17 + $0x18] sm:$0xff]  ;;  %s243_s17 = sand.u32 1, %s1545_s22  }
  0x1a   : > { %406 = vmatprep.subr.bf16.mxu0 %v1556_v2  ;;  %s1250_s18 = sshll.u32 %s243_s17, 4  ;;  %s1813_s25 = scalar_lea.sflag [#allocation3], %s243_s17 }
  0x1b   : > { %s245_s9 = scalar_lea.vmem [#allocation2], %s1250_s18  ;;  %s1497_s18 = scalar_lea.vmem %s1496_s16, 512 }
  0x1c   : > { %407 = vmatpush1.bf16.msra.mxu0 %v1444_v7 }
  0x1d   : > { %285 = vperm.xlu1 %1437, %v255_v6   ;;  %265 = vperm.xlu0 %1436, %v255_v6  }
  0x1e   : > { %408 = vmatprep.subr.bf16.mxu0 %v1556_v2 }
  0x20   : > { %409 = vmatpush1.bf16.msra.mxu0 %v1445_v10 }
  0x21   : > { %1438 = vset.pattern.permute.xlu1 %v1556_v2  ;;  %268 = vperm.xlu0 %1436, %v256_v8  }
  0x22   : > { %271 = vperm.xlu1 %1438, %v257_v9   ;;  %410 = vmatprep.subr.bf16.mxu0 %v1556_v2 }
  0x24   : > { %411 = vmatpush1.bf16.msra.mxu0 %v1446_v11 }
  0x25   : > { %1439 = vset.pattern.permute.xlu0 %v1555_v1  ;;  %412 = vmatprep.subr.bf16.mxu0 %v1556_v2 }
  0x26   : > { %1440 = vset.pattern.permute.xlu1 %v1555_v1  ;;  %288 = vperm.xlu0 %1439, %v256_v8  }
  0x27   : > { %291 = vperm.xlu1 %1440, %v257_v9  }
  0x28   : > { %413 = vmatpush1.bf16.msra.mxu0 %v1447_v12 }
  0x29   : > { %414 = vmatprep.subr.bf16.mxu0 %v1556_v2 }
  0x2c   : > { %415 = vmatpush1.bf16.msra.mxu0 %v1448_v13 }
  0x2d   : > { %416 = vmatprep.subr.bf16.mxu0 %v1556_v2 }
  0x30   : > { %417 = vmatpush1.bf16.msra.mxu0 %v1449_v14 }
  0x31   : > { %1363 = vmatprep.subr.bf16.mxu0 %v1557_v15 }
  0x98   : > { %v283_v19 = vpop.permute.xlu1 %282  ;;  %v263_v20 = vpop.permute.xlu0 %262 }
  0x99   : > { %vm294_vm0 = vcmp.eq.s32.totalorder %v260_v18, %v283_v19  ;;  %vm274_vm1 = vcmp.eq.s32.totalorder %v260_v18, %v263_v20  ;;  %vm293_vm7 = vcmp.eq.s32.totalorder %v259_v17, %v283_v19  ;;  %vm273_vm8 = vcmp.eq.s32.totalorder %v259_v17, %v263_v20 }
  0x9a   : > { %vm302_vm2 = vmor %vm274_vm1, %vm294_vm0 }
  0x9b   : > { %v310_v24 = vsel %vm302_vm2, 1.0, %v1557_v15  ;;  %vm301_vm12 = vmor %vm273_vm8, %vm293_vm7 }
  0x9c   : > { %v286_v21 = vpop.permute.xlu1 %285  ;;  %v266_v22 = vpop.permute.xlu0 %265 }
  0x9d   : > { %vm295_vm3 = vcmp.eq.s32.totalorder %v259_v17, %v286_v21  ;;  %vm296_vm4 = vcmp.eq.s32.totalorder %v260_v18, %v286_v21  ;;  %vm275_vm5 = vcmp.eq.s32.totalorder %v259_v17, %v266_v22  ;;  %vm276_vm6 = vcmp.eq.s32.totalorder %v260_v18, %v266_v22 }
  0x9e   : > { %vm304_vm9 = vmor %vm276_vm6, %vm296_vm4 }
  0x9f   : > { %vm303_vm10 = vmor %vm275_vm5, %vm295_vm3  ;;  %v312_v25 = vsel %vm304_vm9, 1.0, %v1557_v15 }
  0xa0   : > { %v269_v23 = vpop.permute.xlu0 %268  ;;  %v318_v27 = vpack.c.bf16 %v312_v25, %v310_v24  ;;  %vm1263_vm13 = vmpackc.low %vm303_vm10, %vm301_vm12  ;;  %vm472_vm12 = vcmask 261120  }
  0xa1   : > { %v272_v26 = vpop.permute.xlu1 %271  ;;  %vm278_vm0 = vcmp.eq.s32.totalorder %v260_v18, %v269_v23  ;;  %vm277_vm3 = vcmp.eq.s32.totalorder %v259_v17, %v269_v23 }
  0xa2   : > { %1262 = vmatprep.mubr.msk.bf16.mxu0 %vm393_vm11, %v318_v27  ;;  %vm280_vm5 = vcmp.eq.s32.totalorder %v260_v18, %v272_v26  ;;  %vm279_vm9 = vcmp.eq.s32.totalorder %v259_v17, %v272_v26 }
  0xa3   : > { %1264 = vmatmul.mubr.msk.bf16.vlgmr.msra.gmra.mrb[0].mxu0 %vm1263_vm13, %v1558_v28  ;;  %vm1559_vm13 = vmmov 0  }
  0xa5   : > { %v289_v29 = vpop.permute.xlu0 %288 }
  0xa6   : > { %vm297_vm14 = vcmp.eq.s32.totalorder %v259_v17, %v289_v29  ;;  %vm298_vm15 = vcmp.eq.s32.totalorder %v260_v18, %v289_v29  ;;  %v292_v30 = vpop.permute.xlu1 %291 }
  0xa7   : > { %vm300_vm1 = vcmp.eq.s32.totalorder %v260_v18, %v292_v30  ;;  %vm306_vm4 = vmor %vm278_vm0, %vm298_vm15  ;;  %vm299_vm2 = vcmp.eq.s32.totalorder %v259_v17, %v292_v30  ;;  %vm824_vm15 = vcmask 1043456   ;;  %vm1048_vm0 = vcmask 195584  }
  0xa8   : > { %vm305_vm6 = vmor %vm277_vm3, %vm297_vm14  ;;  %v314_v31 = vsel %vm306_vm4, 1.0, %v1557_v15  ;;  %vm726_vm14 = vcmask 64512  }
  0xa9   : > { %vm308_vm7 = vmor %vm280_vm5, %vm300_vm1 }
  0xaa   : > { %vm307_vm8 = vmor %vm279_vm9, %vm299_vm2  ;;  %v316_v32 = vsel %vm308_vm7, 1.0, %v1557_v15 }
  0xab   : > { %v320_v33 = vpack.c.bf16 %v316_v32, %v314_v31  ;;  %vm1266_vm10 = vmpackc.low %vm307_vm8, %vm305_vm6 }
  0xad   : > { %1265 = vmatprep.mubr.msk.bf16.mxu0 %vm393_vm11, %v320_v33 }
  0xae   : > { %1267 = vmatmul.mubr.msk.bf16.gmra.mrb[4].mxu0 %vm1266_vm10, %v1558_v28 }
  0xaf   : > { %1365 = vmatprep.mubr.msk.bf16.mxu0 %vm1559_vm13, %v1557_v15 }
 0x176   : > { %v434_v36 = vpop.f32.mrb[0].mxu0 }
 0x177   : > { %v436_v37 = vpop.f32.mrb[1].mxu0 }
 0x178   : > { %v437_v38 = vpop.f32.mrb[2].mxu0 }
 0x179   : > { %v449_v39 = vpack.c.bf16 %v437_v38, %v434_v36  ;;  %v439_v40 = vpop.f32.mrb[3].mxu0 }
 0x17b   : > { %1329 = vmatprep.mubr.msk.bf16.mxu1 %vm472_vm12, %v449_v39 }
 0x181   : > { %v442_v41 = vpop.f32.mrb[4].mxu0 }
 0x182   : > { %v444_v42 = vpop.f32.mrb[5].mxu0 }
 0x183   : > { %v445_v43 = vpop.f32.mrb[6].mxu0 }
 0x184   : > { %v450_v44 = vpack.c.bf16 %v445_v43, %v442_v41  ;;  %v447_v45 = vpop.f32.mrb[7].mxu0 }
 0x186   : > { %1330 = vmatmul.mubr.msk.bf16.vlgmr.msra.gmra.mrb[0].mxu1 %vm472_vm12, %v450_v44 }
 0x187   : > { %1335 = vmatprep.mubr.msk.bf16.mxu1 %vm1559_vm13, %v1557_v15 }
 0x259   : > { %v1331_v47 = vpop.f32.mrb[0].mxu1 }
 0x25a   : > { %v513_v48 = vpop.f32.mrb[1].mxu1  ;;  %v522_v57 = vadd.f32 %v1331_v47, %v1268_v46 }
 0x25b   : > { %v514_v49 = vadd.f32 %v1268_v46, %v513_v48  ;;  %v1332_v50 = vpop.f32.mrb[2].mxu1 }
 0x25c   : > { %v516_v51 = vpop.f32.mrb[3].mxu1  ;;  %v1711_v59 = vpack.c.bf16 %v522_v57, %v522_v57  ;;  %v525_v61 = vadd.f32 %v1332_v50, %v1268_v46 }
 0x25d   : > { %v1297_v52 = vpack.c.bf16 %v514_v49, %v514_v49  ;;  %v517_v54 = vadd.f32 %v1268_v46, %v516_v51 }
 0x25e   : > { %v639_v60 = vsel %vm472_vm12, %v1711_v59, 0  ;;  %v1719_v62 = vpack.c.bf16 %v525_v61, %v525_v61 }
 0x25f   : > { %v551_v53 = vsel %vm472_vm12, %v1297_v52, 0  ;;  %v1298_v55 = vpack.c.bf16 %v517_v54, %v517_v54 }
 0x260   : > { %1334 = vmatpush3.bf16.xpose.msra.mxu1 %v551_v53  ;;  %v683_v63 = vsel %vm472_vm12, %v1719_v62, 0 }
 0x261   : > { %1339 = vmatprep.subr.bf16.mxu1 %v1557_v15  ;;  %v595_v58 = vsel %vm472_vm12, %v1298_v55, 0 }
 0x267   : > { %1336 = vmatmul.mubr.msk.bf16.vlgmr.msra.gmra.mrb[4].mxu1 %vm472_vm12, %v1452_v56 }
 0x268   : > { %1340 = vmatpush3.bf16.xpose.msra.mxu1 %v595_v58  ;;  %1341 = vmatprep.mubr.msk.bf16.mxu1 %vm1559_vm13, %v1557_v15 }
 0x269   : > { %1345 = vmatprep.subr.bf16.mxu1 %v1557_v15 }
 0x26f   : > { %1342 = vmatmul.mubr.msk.bf16.vlgmr.msra.gmra.mrb[8].mxu1 %vm472_vm12, %v1452_v56 }
 0x270   : > { %1346 = vmatpush3.bf16.xpose.msra.mxu1 %v639_v60  ;;  %1347 = vmatprep.mubr.msk.bf16.mxu1 %vm1559_vm13, %v1557_v15 }
 0x271   : > { %1351 = vmatprep.subr.bf16.mxu1 %v1557_v15 }
 0x277   : > { %1348 = vmatmul.mubr.msk.bf16.vlgmr.msra.gmra.mrb[12].mxu1 %vm472_vm12, %v1452_v56 }
 0x278   : > { %1352 = vmatpush3.bf16.xpose.msra.mxu1 %v683_v63  ;;  %1353 = vmatprep.mubr.msk.bf16.mxu1 %vm1559_vm13, %v1557_v15 }
 0x279   : > { %1357 = vmatprep.subr.bf16.mxu1 %v1557_v15 }
 0x27f   : > { %1354 = vmatmul.mubr.msk.bf16.vlgmr.msra.gmra.mrb[16].mxu1 %vm472_vm12, %v1452_v56 }
 0x280   : > { %1359 = vmatprep.mubr.msk.bf16.mxu1 %vm1559_vm13, %v1557_v15 }
 0x33a   : > { %v587_v0 = vpop.f32.mrb[4].mxu1 }
 0x33b   : > { %v1337_v1 = vpop.f32.mrb[5].mxu1  ;;  %v727_v2 = vsel %vm726_vm14, %v587_v0, -inf }
 0x33c   : > { %728 = vmax.xlane.f32.xlu1 %v727_v2  ;;  %v590_v3 = vpop.f32.mrb[6].mxu1 }
 0x33d   : > { %v1338_v4 = vpop.f32.mrb[7].mxu1  ;;  %v730_v5 = vsel %vm726_vm14, %v590_v3, -inf }
 0x33e   : > { %731 = vmax.xlane.f32.xlu0 %v730_v5 }
 0x342   : > { %v631_v6 = vpop.f32.mrb[8].mxu1 }
 0x343   : > { %v1343_v7 = vpop.f32.mrb[9].mxu1  ;;  %v733_v8 = vsel %vm726_vm14, %v631_v6, -inf }
 0x344   : > { %734 = vmax.xlane.f32.xlu0 %v733_v8  ;;  %v634_v9 = vpop.f32.mrb[10].mxu1 }
 0x345   : > { %v1344_v10 = vpop.f32.mrb[11].mxu1  ;;  %v736_v11 = vsel %vm726_vm14, %v634_v9, -inf }
 0x346   : > { %737 = vmax.xlane.f32.xlu1 %v736_v11 }
 0x34a   : > { %v675_v12 = vpop.f32.mrb[12].mxu1 }
 0x34b   : > { %v1349_v13 = vpop.f32.mrb[13].mxu1  ;;  %v739_v14 = vsel %vm726_vm14, %v675_v12, -inf }
 0x34c   : > { %740 = vmax.xlane.f32.xlu0 %v739_v14  ;;  %v678_v16 = vpop.f32.mrb[14].mxu1 }
 0x34d   : > { %v1350_v17 = vpop.f32.mrb[15].mxu1  ;;  %v742_v18 = vsel %vm726_vm14, %v678_v16, -inf }
 0x34e   : > { %743 = vmax.xlane.f32.xlu1 %v742_v18 }
 0x352   : > { %v719_v19 = vpop.f32.mrb[16].mxu1 }
 0x353   : > { %v1355_v20 = vpop.f32.mrb[17].mxu1  ;;  %v745_v21 = vsel %vm726_vm14, %v719_v19, -inf }
 0x354   : > { %746 = vmax.xlane.f32.xlu0 %v745_v21  ;;  %v722_v22 = vpop.f32.mrb[18].mxu1 }
 0x355   : > { %v1356_v23 = vpop.f32.mrb[19].mxu1  ;;  %v748_v24 = vsel %vm726_vm14, %v722_v22, -inf }
 0x356   : > { %749 = vmax.xlane.f32.xlu1 %v748_v24 }
 0x367   : > { %869 = vrot.lane.b32.xlu1 %v1298_v55, %s1560_s10 }
 0x36a   : > { %819 = vrot.lane.b32.xlu0 %v1297_v52, %s1560_s10 }
 0x3c9   : > { %v729_v25 = vpop.xlane.xlu1 %728 }
 0x3ca   : > { %v751_v26 = vsub.f32 %v587_v0, %v729_v25 }
 0x3cb   : > { %v732_v27 = vpop.xlane.xlu0 %731 }
 0x3cc   : > { %v759_v28 = vmul.f32 1.442695, %v751_v26  ;;  %v752_v29 = vsub.f32 %v590_v3, %v732_v27 }
 0x3ce   : > { %1455 = vpow2.f32 %v759_v28  ;;  %v761_v30 = vmul.f32 1.442695, %v752_v29 }
 0x3d0   : > { %1457 = vpow2.f32 %v761_v30 }
 0x3d1   : > { %v735_v31 = vpop.xlane.xlu0 %734 }
 0x3d2   : > { %v753_v32 = vsub.f32 %v631_v6, %v735_v31 }
 0x3d3   : > { %v738_v33 = vpop.xlane.xlu1 %737 }
 0x3d4   : > { %v763_v34 = vmul.f32 1.442695, %v753_v32  ;;  %v754_v35 = vsub.f32 %v634_v9, %v738_v33 }
 0x3d6   : > { %1459 = vpow2.f32 %v763_v34  ;;  %v765_v36 = vmul.f32 1.442695, %v754_v35 }
 0x3d8   : > { %v1456_v37 = vpop.eup %1455  ;;  %1461 = vpow2.f32 %v765_v36 }
 0x3d9   : > { %v741_v38 = vpop.xlane.xlu0 %740  ;;  %v775_v39 = vsel %vm726_vm14, %v1456_v37, 0.0 }
 0x3da   : > { %v1458_v40 = vpop.eup %1457  ;;  %v755_v41 = vsub.f32 %v675_v12, %v741_v38  ;;  %776 = vadd.xlane.f32.xlu0 %v775_v39  ;;  %v1453_v38 = vld [vmem:[%s1858_s4] sm:$0xff]   ;;  %v1454_v39 = vld [vmem:[%s1858_s4 + $0x8] sm:$0xff]  }
 0x3db   : > { %v744_v42 = vpop.xlane.xlu1 %743  ;;  %v778_v43 = vsel %vm726_vm14, %v1458_v40, 0.0 }
 0x3dc   : > { %v767_v44 = vmul.f32 1.442695, %v755_v41  ;;  %v756_v45 = vsub.f32 %v678_v16, %v744_v42  ;;  %779 = vadd.xlane.f32.xlu1 %v778_v43 }
 0x3de   : > { %1463 = vpow2.f32 %v767_v44  ;;  %v769_v46 = vmul.f32 1.442695, %v756_v45 }
 0x3e0   : > { %v1460_v47 = vpop.eup %1459  ;;  %1465 = vpow2.f32 %v769_v46 }
 0x3e1   : > { %v747_v48 = vpop.xlane.xlu0 %746  ;;  %v781_v49 = vsel %vm726_vm14, %v1460_v47, 0.0 }
 0x3e2   : > { %v1462_v50 = vpop.eup %1461  ;;  %v757_v51 = vsub.f32 %v719_v19, %v747_v48  ;;  %782 = vadd.xlane.f32.xlu0 %v781_v49 }
 0x3e3   : > { %v750_v52 = vpop.xlane.xlu1 %749  ;;  %v784_v53 = vsel %vm726_vm14, %v1462_v50, 0.0 }
 0x3e4   : > { %v771_v54 = vmul.f32 1.442695, %v757_v51  ;;  %v758_v55 = vsub.f32 %v722_v22, %v750_v52  ;;  %785 = vadd.xlane.f32.xlu1 %v784_v53 }
 0x3e5   : > { %v820_v56 = vpop.permute.xlu0 %819 }
 0x3e6   : > { %1467 = vpow2.f32 %v771_v54  ;;  %v773_v57 = vmul.f32 1.442695, %v758_v55  ;;  %v826_v58 = vsel %vm824_vm15, %v820_v56, 0 }
 0x3e7   : > { %1358 = vmatpush3.bf16.msra.mxu1 %v826_v58  ;;  %v870_v60 = vpop.permute.xlu1 %869 }
 0x3e8   : > { %v1464_v61 = vpop.eup %1463  ;;  %1469 = vpow2.f32 %v773_v57  ;;  %v875_v63 = vsel %vm824_vm15, %v870_v60, 0  ;;  %1369 = vmatprep.subr.bf16.mxu1 %v1557_v15 }
 0x3e9   : > { %1364 = vmatpush3.bf16.msra.mxu0 %v875_v63  ;;  %v787_v0 = vsel %vm726_vm14, %v1464_v61, 0.0 }
 0x3ea   : > { %v1466_v1 = vpop.eup %1465  ;;  %788 = vadd.xlane.f32.xlu0 %v787_v0  ;;  %1375 = vmatprep.subr.bf16.mxu0 %v1557_v15 }
 0x3eb   : > { %v790_v2 = vsel %vm726_vm14, %v1466_v1, 0.0 }
 0x3ec   : > { %791 = vadd.xlane.f32.xlu1 %v790_v2 }
 0x3f0   : > { %v1468_v3 = vpop.eup %1467 }
 0x3f1   : > { %v793_v4 = vsel %vm726_vm14, %v1468_v3, 0.0 }
 0x3f2   : > { %v1470_v5 = vpop.eup %1469  ;;  %794 = vadd.xlane.f32.xlu0 %v793_v4 }
 0x3f3   : > { %v796_v6 = vsel %vm726_vm14, %v1470_v5, 0.0 }
 0x3f4   : > { %797 = vadd.xlane.f32.xlu1 %v796_v6 }
 0x405   : > { %918 = vrot.lane.b32.xlu1 %v1711_v59, %s1560_s10 }
 0x408   : > { %967 = vrot.lane.b32.xlu0 %v1719_v62, %s1560_s10  ;;  %s1184_s10 = sshll.u32 %s245_s9, 4  ;;  %s1809_s10 = int_to_ptr.vmem [resolvable:$true] %s1184_s10 }
 0x409   : > { %s1491_s14 = scalar_lea.vmem %s1809_s10, 256  ;;  %p1498_p0 = scmp.lt.s32.totalorder %s1809_s10, %s1496_s16 }
 0x40a   : > { %p1492_p11 = scmp.ne.s32.totalorder %s1809_s10, %s1491_s14  ;;  %p1499_p1 = scmp.lt.s32.totalorder %s1497_s18, %s1491_s14 }
 0x40c   : > { %p1493_p12 = pnand %p1492_p11, %p1637_p5  ;;  %p1500_p2 = por %p1499_p1, %p1498_p0 }
 0x40e   : > { %p1494_p13 = pneg %p1493_p12 }
 0x410   : > { %p1501_p3 = pnand %p1500_p2, %p1494_p13 }
 0x467   : > { %v777_v7 = vpop.xlane.xlu0 %776 }
 0x468   : > { %1471 = vrcp.f32 %v777_v7 }
 0x469   : > { %v780_v8 = vpop.xlane.xlu1 %779 }
 0x46a   : > { %1473 = vrcp.f32 %v780_v8 }
 0x46f   : > { %v783_v9 = vpop.xlane.xlu0 %782 }
 0x470   : > { %1475 = vrcp.f32 %v783_v9 }
 0x471   : > { %v786_v10 = vpop.xlane.xlu1 %785 }
 0x472   : > { %v1472_v11 = vpop.eup %1471  ;;  %1477 = vrcp.f32 %v786_v10 }
 0x473   : > { %v807_v13 = vmul.f32 %v1472_v11, %v1456_v37 }
 0x474   : > { %v1474_v12 = vpop.eup %1473 }
 0x475   : > { %v808_v14 = vmul.f32 %v1474_v12, %v1458_v40 }
 0x477   : > { %v789_v16 = vpop.xlane.xlu0 %788  ;;  %v815_v17 = vpack.c.bf16 %v808_v14, %v807_v13 }
 0x478   : > { %1479 = vrcp.f32 %v789_v16 }
 0x479   : > { %1360 = vmatmul.mubr.msk.bf16.vlgmr.msra.gmra.mrb[20].mxu1 %vm726_vm14, %v815_v17  ;;  %v792_v59 = vpop.xlane.xlu1 %791  ;;  %v1286_v17 = vld [vmem:[%s1859_s5 + $0x1] ss:$0 sm:$0xff] }
 0x47a   : > { %v1476_v18 = vpop.eup %1475  ;;  %1481 = vrcp.f32 %v792_v59  ;;  %1371 = vmatprep.mubr.msk.bf16.mxu1 %vm1559_vm13, %v1557_v15 }
 0x47b   : > { %v809_v19 = vmul.f32 %v1476_v18, %v1460_v47 }
 0x47c   : > { %v1478_v62 = vpop.eup %1477 }
 0x47d   : > { %v810_v20 = vmul.f32 %v1478_v62, %v1462_v50 }
 0x47f   : > { %v816_v21 = vpack.c.bf16 %v810_v20, %v809_v19  ;;  %v795_v22 = vpop.xlane.xlu0 %794 }
 0x480   : > { %1483 = vrcp.f32 %v795_v22 }
 0x481   : > { %1366 = vmatmul.mubr.msk.bf16.vlgmr.msra.gmra.mrb[8].mxu0 %vm726_vm14, %v816_v21  ;;  %v798_v23 = vpop.xlane.xlu1 %797 }
 0x482   : > { %v1480_v24 = vpop.eup %1479  ;;  %1485 = vrcp.f32 %v798_v23  ;;  %1377 = vmatprep.mubr.msk.bf16.mxu0 %vm1559_vm13, %v1557_v15 }
 0x483   : > { %v968_v25 = vpop.permute.xlu0 %967  ;;  %v811_v28 = vmul.f32 %v1480_v24, %v1464_v61 }
 0x484   : > { %v1482_v26 = vpop.eup %1481  ;;  %v973_v27 = vsel %vm824_vm15, %v968_v25, 0 }
 0x485   : > { %v812_v29 = vmul.f32 %v1482_v26, %v1466_v1  ;;  %1376 = vmatpush3.bf16.msra.mxu0 %v973_v27  ;;  %v919_v30 = vpop.permute.xlu1 %918 }
 0x486   : > { %v924_v31 = vsel %vm824_vm15, %v919_v30, 0 }
 0x487   : > { %1370 = vmatpush3.bf16.msra.mxu1 %v924_v31  ;;  %v817_v32 = vpack.c.bf16 %v812_v29, %v811_v28 }
 0x488   : > { %1381 = vmatprep.subr.bf16.mxu1 %v1557_v15 }
 0x48a   : > { %v1484_v33 = vpop.eup %1483  ;;  %1372 = vmatmul.mubr.msk.bf16.vlgmr.msra.gmra.mrb[24].mxu1 %vm726_vm14, %v817_v32 }
 0x48b   : > { %1385 = vmatprep.mubr.msk.bf16.mxu1 %vm1559_vm13, %v1557_v15  ;;  %v813_v35 = vmul.f32 %v1484_v33, %v1468_v3  ;;  %1382 = vmatpush3.bf16.msra.mxu1 %v1453_v38 }
 0x48c   : > { %v1486_v34 = vpop.eup %1485  ;;  %1383 = vmatprep.subr.bf16.mxu1 %v1557_v15 }
 0x48d   : > { %v814_v36 = vmul.f32 %v1486_v34, %v1470_v5 }
 0x48f   : > { %v818_v37 = vpack.c.bf16 %v814_v36, %v813_v35  ;;  %1384 = vmatpush3.bf16.msra.mxu1 %v1454_v39 }
 0x491   : > { %1378 = vmatmul.mubr.msk.bf16.vlgmr.msra.gmra.mrb[12].mxu0 %vm726_vm14, %v818_v37 }
 0x54c   : > { %v862_v40 = vpop.f32.mrb[20].mxu1 }
 0x54d   : > { %v1020_v41 = vrot.slane %v862_v40, 4  ;;  %v1361_v42 = vpop.f32.mrb[21].mxu1 }
 0x54e   : > { %v865_v43 = vpop.f32.mrb[22].mxu1 }
 0x54f   : > { %v1040_v44 = vsel %vm726_vm14, %v862_v40, %v1020_v41  ;;  %v1032_v45 = vrot.slane %v865_v43, 4  ;;  %v1362_v46 = vpop.f32.mrb[23].mxu1  ;;  %v1290_v41 = vld [vmem:[%s1859_s5 + $0x2] ss:$0 sm:$0xff] }
 0x550   : > { %v1044_v47 = vsel %vm393_vm11, %v1040_v44, %v865_v43  ;;  %v1291_v44 = vld [vmem:[%s1859_s5 + $0x3] ss:$0 sm:$0xff] }
 0x551   : > { %v1049_v48 = vsel %vm1048_vm0, %v1044_v47, %v1032_v45 }
 0x554   : > { %v911_v49 = vpop.f32.mrb[8].mxu0 }
 0x555   : > { %v1021_v15 = vrot.slane %v911_v49, 4  ;;  %v1367_v50 = vpop.f32.mrb[9].mxu0 }
 0x556   : > { %v914_v51 = vpop.f32.mrb[10].mxu0 }
 0x557   : > { %v1041_v52 = vsel %vm726_vm14, %v911_v49, %v1021_v15  ;;  %v1033_v53 = vrot.slane %v914_v51, 4  ;;  %v1368_v54 = vpop.f32.mrb[11].mxu0 }
 0x558   : > { %v1045_v55 = vsel %vm393_vm11, %v1041_v52, %v914_v51 }
 0x559   : > { %v1050_v56 = vsel %vm1048_vm0, %v1045_v55, %v1033_v53 }
 0x55a   : > { %v1057_v57 = vcombine.low %v1049_v48, %v1050_v56 }
 0x55d   : > { %v960_v58 = vpop.f32.mrb[24].mxu1 }
 0x55e   : > { %v1022_v60 = vrot.slane %v960_v58, 4  ;;  %v1373_v61 = vpop.f32.mrb[25].mxu1 }
 0x55f   : > { %v963_v63 = vpop.f32.mrb[26].mxu1 }
 0x560   : > { %v1042_v0 = vsel %vm726_vm14, %v960_v58, %v1022_v60  ;;  %v1034_v1 = vrot.slane %v963_v63, 4  ;;  %v1374_v2 = vpop.f32.mrb[27].mxu1 }
 0x561   : > { %v1046_v3 = vsel %vm393_vm11, %v1042_v0, %v963_v63 }
 0x562   : > { %v1051_v4 = vsel %vm1048_vm0, %v1046_v3, %v1034_v1 }
 0x564   : > { %v1009_v5 = vpop.f32.mrb[12].mxu0 }
 0x565   : > { %v1023_v6 = vrot.slane %v1009_v5, 4  ;;  %v1379_v7 = vpop.f32.mrb[13].mxu0 }
 0x566   : > { %v1012_v8 = vpop.f32.mrb[14].mxu0 }
 0x567   : > { %v1043_v9 = vsel %vm726_vm14, %v1009_v5, %v1023_v6  ;;  %v1035_v10 = vrot.slane %v1012_v8, 4  ;;  %v1380_v11 = vpop.f32.mrb[15].mxu0 }
 0x568   : > { %v1047_v12 = vsel %vm393_vm11, %v1043_v9, %v1012_v8 }
 0x569   : > { %v1052_v13 = vsel %vm1048_vm0, %v1047_v12, %v1035_v10 }
 0x56a   : > { %v1058_v14 = vcombine.low %v1051_v4, %v1052_v13 }
 0x56c   : > { %v1061_v16 = vpack.c.bf16 %v1058_v14, %v1057_v57 }
 0x56e   : > { %1386 = vmatmul.mubr.msk.bf16.vlgmr.msra.gmra.mrb[28].mxu1 %vm472_vm12, %v1061_v16 }
 0x641   : > { %v1120_v59 = vpop.f32.mrb[28].mxu1 }
 0x642   : > { %v1121_v18 = vadd.f32 %v1286_v17, %v1120_v59  ;;  %v1387_v62 = vpop.f32.mrb[29].mxu1 }
 0x643   : > { %v1123_v19 = vpop.f32.mrb[30].mxu1 }
 0x644   : > { %v1124_v20 = vadd.f32 %v1286_v17, %v1123_v19  ;;  %v1388_v21 = vpop.f32.mrb[31].mxu1  ;;  %v1127_v22 = vsel %vm472_vm12, %v1121_v18, 0.0 }
 0x645   : > { %1128 = vadd.xlane.f32.xlu1 %v1127_v22 }
 0x646   : > { %v1130_v23 = vsel %vm472_vm12, %v1124_v20, 0.0 }
 0x647   : > { %1131 = vadd.xlane.f32.xlu0 %v1130_v23 }
 0x6d2   : > { %v1129_v24 = vpop.xlane.xlu1 %1128 }
 0x6d3   : > { %v1134_v25 = vmul.f32 0.03125, %v1129_v24 }
 0x6d4   : > { %v1132_v26 = vpop.xlane.xlu0 %1131 }
 0x6d5   : > { %v1136_v27 = vsub.f32 %v1121_v18, %v1134_v25  ;;  %v1135_v28 = vmul.f32 0.03125, %v1132_v26 }
 0x6d7   : > { %v1137_v29 = vsub.f32 %v1124_v20, %v1135_v28  ;;  %v1138_v30 = vmul.f32 %v1136_v27, %v1136_v27 }
 0x6d9   : > { %v1140_v31 = vsel %vm472_vm12, %v1138_v30, 0.0  ;;  %v1139_v32 = vmul.f32 %v1137_v29, %v1137_v29 }
 0x6da   : > { %1141 = vadd.xlane.f32.xlu0 %v1140_v31 }
 0x6db   : > { %v1143_v33 = vsel %vm472_vm12, %v1139_v32, 0.0 }
 0x6dc   : > { %1144 = vadd.xlane.f32.xlu1 %v1143_v33 }
 0x767   : > { %v1142_v34 = vpop.xlane.xlu0 %1141 }
 0x768   : > { %v1146_v35 = vmul.f32 0.03125, %v1142_v34 }
 0x769   : > { %v1145_v36 = vpop.xlane.xlu1 %1144 }
 0x76a   : > { %v1148_v37 = vadd.f32 1e-05, %v1146_v35  ;;  %v1147_v38 = vmul.f32 0.03125, %v1145_v36 }
 0x76c   : > { %1487 = vrsqrt.f32 %v1148_v37  ;;  %v1149_v39 = vadd.f32 1e-05, %v1147_v38 }
 0x76e   : > { %1489 = vrsqrt.f32 %v1149_v39 }
 0x776   : > { %v1488_v40 = vpop.eup %1487 }
 0x777   : > { %v1152_v42 = vmul.f32 %v1488_v40, %v1136_v27 }
 0x778   : > { %v1490_v43 = vpop.eup %1489 }
 0x779   : > { %v1159_v45 = vmul.f32 %v1290_v41, %v1152_v42  ;;  %v1153_v46 = vmul.f32 %v1490_v43, %v1137_v29 }
 0x77b   : > { %v1166_v47 = vadd.f32 %v1291_v44, %v1159_v45  ;;  %v1160_v48 = vmul.f32 %v1290_v41, %v1153_v46 }
 0x77d   : > { %v1167_v49 = vadd.f32 %v1291_v44, %v1160_v48  ;;  %1168 = vst.msk [vmem:[%s245_s9] sm:$0xff] %vm472_vm12, %v1166_v47 }
 0x77f   : > { %1169 = vst.msk [vmem:[%s245_s9 + $0x8] sm:$0xff] %vm472_vm12, %v1167_v49 }
 0x780   : > { %1504 = shalt.err (!%p1501_p3)
}
 0x781   : > { %s1505_s17 = scalar_lea.hbm %s1807_s13, 256  ;;  %s1509_s26 = scalar_lea.hbm %s1860_s6, 512 }
 0x782   : > { %p1506_p4 = scmp.ne.s32.totalorder %s1807_s13, %s1505_s17  ;;  %p1510_p9 = scmp.lt.u32.totalorder %s1807_s13, %s1860_s6 }
 0x783   : > { %p1511_p10 = scmp.lt.u32.totalorder %s1509_s26, %s1505_s17  ;;  %p1513_p12 = scmp.lt.u32.totalorder %s1505_s17, %s1807_s13 }
 0x784   : > { %p1507_p7 = pnand %p1506_p4, %p1637_p5 }
 0x785   : > { %p1512_p11 = por %p1511_p10, %p1510_p9 }
 0x786   : > { %p1508_p8 = pneg %p1507_p7 }
 0x787   : > { %p1514_p13 = por %p1513_p12, %p1512_p11 }
 0x789   : > { %p1515_p0 = pnand %p1514_p13, %p1508_p8 }
 0x78b   : > { %1518 = shalt.err (!%p1515_p0)
}
 0x78c   : > { %s1562_s9 = smov 128   ;;  %s1563_s11 = smov 8  }
 0x78d   : > { %1389 = dma.vmem_to_hbm [thread:$0]  (%p1637_p5), %s1809_s10, 256, %s1807_s13, %s1813_s25, %s1562_s9, %s1562_s9, %s1563_s11  }
 0x78e PF: > { %p1395_p1 = scmp.ge.s32.totalorder %s1553_s24, 2  ;;  %s1199_s12 = sand.u32 1, %s1541_s21  }
 0x78f   : > { %s1200_s14 = scalar_lea.sflag [#allocation3], %s1199_s12 }
 0x790   : > { %p1392_p2 = pnand %p1395_p1, %p1641_p6 }
 0x792   : > { %1536 = dma.done.wait (!%p1392_p2), %s1200_s14, 256  }
 0x793   : > { %1538 = vsyncadd (!%p1392_p2), %s1200_s14, 4294967040  ;;  %p16_p3 = scmp.ge.s32.totalorder %s1624_s27, 4   ;;  %s1863_s21 = smov %s1545_s22 }
 0x794   : > { %s1864_s22 = smov %s1549_s23  ;;  %s1865_s23 = smov %s1635_s30 }
 0x795   : > { %s1866_s24 = smov %s1624_s27  ;;  %18 = sbr.rel (!%p16_p3) target bundleno = 3 (0x3), region = 79 }
 0x79c   :  { %1205 = vsyncpa [#allocation3], 1 }
 0x79d   :  { %1207 = vsyncpa [#allocation3 + $0x1], 1 }

</bundles_post_ra>
